<compile_context>
chip_gen: v7x
topology: tpu7x:2x2x1
jax: 0.10.0
libtpu: 0.0.40
codegen_flags: <defaults>
</compile_context>

<pallas_src>
import jax
import jax.numpy as jnp
from jax.experimental import pallas as pl
from jax.experimental.pallas import tpu as pltpu


def _mlp_kernel(x_ref, w_ref, b_ref, o_ref):
    # x_ref: (TB, TK) f32 VMEM tile of input rows for this (batch, k) step.
    # w_ref: (1, TK)  f32 VMEM lane-dense weight slice (natural Linear layout).
    # b_ref: (1, 1)   f32 SMEM scalar bias.
    # o_ref: (1, TB)  f32 lane-dense output block; doubles as the accumulator
    #                 across the K grid axis (same block index for every k).
    k = pl.program_id(1)

    @pl.when(k == 0)
    def _init():
        # Start the accumulator at the bias value.
        o_ref[...] = jnp.full(o_ref.shape, b_ref[0, 0], dtype=o_ref.dtype)

    # VPU multiply (sublane broadcast of the weight row) + XLU lane reduction.
    s = jnp.sum(x_ref[...] * w_ref[...], axis=-1)            # (TB,)
    o_ref[...] += s[None, :]


def one_layer_mlp(x, weight, bias, *, tb_max=1024, tk_max=1024,
                  x_tile_bytes=4 << 20):
    """Pallas equivalent of OneLayerMLP.forward.

    Args:
      x:      (B, F) float array
      weight: (1, F) float array (torch nn.Linear weight layout)
      bias:   (1,)   float array
    Returns:
      (B, 1) float32
    """
    B, F = x.shape
    x = jnp.asarray(x, jnp.float32)
    w = jnp.asarray(weight, jnp.float32).reshape(1, F)   # keep natural (1, F)
    b = jnp.asarray(bias, jnp.float32).reshape(1, 1)     # scalar -> SMEM

    # ---- K (feature) tiling -------------------------------------------------
    tk_max = max(128, (tk_max // 128) * 128)
    if F <= tk_max:
        tk, nk, f_pad = F, 1, F                 # single K tile, no padding
    else:
        tk = tk_max                             # lane-aligned K tile
        nk = pl.cdiv(F, tk)
        f_pad = nk * tk
        x = jnp.pad(x, ((0, 0), (0, f_pad - F)))
        w = jnp.pad(w, ((0, 0), (0, f_pad - F)))

    # ---- batch tiling ---------------------------------------------------------
    # Mem-bound kernel: make the double-buffered x tile the dominant VMEM user,
    # large enough to amortize the ~0.35us per-grid-step overhead, small enough
    # for every generation's scoped-VMEM default.
    tb_max = max(128, (tb_max // 128) * 128)
    tb = (x_tile_bytes // (tk * 4)) // 128 * 128
    tb = int(min(max(tb, 128), tb_max))
    b_round = ((B + 7) // 8) * 8                # sublane-aligned batch
    if b_round <= tb:
        tb = b_round                            # single tile: block == full dims
    num_b = pl.cdiv(B, tb)
    b_pad = num_b * tb
    if b_pad != B:
        # Pad ragged batches so every (tb, tk) / (1, tb) block is in-bounds.
        x = jnp.pad(x, ((0, b_pad - B), (0, 0)))

    out = pl.pallas_call(
        _mlp_kernel,
        out_shape=jax.ShapeDtypeStruct((1, b_pad), jnp.float32),
        grid=(num_b, nk),                                        # reduction last
        in_specs=[
            pl.BlockSpec((tb, tk), lambda i, k: (i, k)),          # x tile
            pl.BlockSpec((1, tk), lambda i, k: (0, k)),           # weight slice
            pl.BlockSpec(memory_space=pltpu.MemorySpace.SMEM),    # bias scalar
        ],
        out_specs=pl.BlockSpec((1, tb), lambda i, k: (0, i)),     # lane-dense out
        compiler_params=pltpu.CompilerParams(
            dimension_semantics=("parallel", "arbitrary"),
        ),
    )(x, w, b)

    # Free layout plumbing: (1, b_pad) lane-dense -> (B, 1) torch Linear layout.
    return out.reshape(b_pad)[:B].reshape(B, 1)


if __name__ == "__main__":
    # Small deterministic setup consistent with the module's forward:
    # input_size = 32 features, batch of 8 samples.
    batch, input_size = 8, 32

    key = jax.random.PRNGKey(0)
    kx, kw, kb = jax.random.split(key, 3)

    x = jax.random.normal(kx, (batch, input_size), dtype=jnp.float32)

    # nn.Linear default init: U(-1/sqrt(fan_in), 1/sqrt(fan_in)) for W and b.
    bound = 1.0 / (input_size ** 0.5)
    weight = jax.random.uniform(
        kw, (1, input_size), dtype=jnp.float32, minval=-bound, maxval=bound)
    bias = jax.random.uniform(
        kb, (1,), dtype=jnp.float32, minval=-bound, maxval=bound)

    out = jax.block_until_ready(one_layer_mlp(x, weight, bias))
    ref = x @ weight.T + bias
    assert out.shape == (batch, 1)
    assert jnp.allclose(out, ref, atol=1e-5, rtol=1e-5)

    # Also exercise the multi-tile paths (ragged batch tiles + K reduction).
    B2, F2 = 700, 200
    k2x, k2w, k2b = jax.random.split(jax.random.PRNGKey(1), 3)
    x2 = jax.random.normal(k2x, (B2, F2), dtype=jnp.float32)
    w2 = jax.random.normal(k2w, (1, F2), dtype=jnp.float32) * 0.05
    b2 = jax.random.normal(k2b, (1,), dtype=jnp.float32)
    out2 = jax.block_until_ready(
        one_layer_mlp(x2, w2, b2, tb_max=256, tk_max=128))
    ref2 = x2 @ w2.T + b2
    assert out2.shape == (B2, 1)
    assert jnp.allclose(out2, ref2, atol=1e-4, rtol=1e-4)

    print("KERNEL_OK")
</pallas_src>

<mosaic_0001>
module attributes {stable_mosaic.version = 11 : i64} {
  func.func @_mlp_kernel(%arg0: i32, %arg1: i32, %arg2: memref<8x32xf32, #tpu.memory_space<vmem>>, %arg3: memref<1x32xf32, #tpu.memory_space<vmem>>, %arg4: memref<1x1xf32, #tpu.memory_space<smem>>, %arg5: memref<1x8xf32, #tpu.memory_space<vmem>>) attributes {dimension_semantics = [#tpu.dimension_semantics<parallel>, #tpu.dimension_semantics<arbitrary>], iteration_bounds = array<i64: 1, 1>, scalar_prefetch = 0 : i64, scratch_operands = 0 : i64, tpu.core_type = #tpu.core_type<tc>, window_params = [{transform_indices = @transform_0, window_bounds = array<i64: 8, 32>}, {transform_indices = @transform_1, window_bounds = array<i64: 1, 32>}, {transform_indices = @transform_2, window_bounds = array<i64: 1, 1>}, {transform_indices = @transform_3, window_bounds = array<i64: 1, 8>}]} {
    %c0_i32 = arith.constant 0 : i32
    %0 = arith.cmpi eq, %arg1, %c0_i32 : i32
    %1 = arith.extui %0 : i1 to i32
    %c0_i32_0 = arith.constant 0 : i32
    %2 = arith.cmpi ne, %1, %c0_i32_0 : i32
    scf.if %2 {
      %c0_8 = arith.constant 0 : index
      %c0_9 = arith.constant 0 : index
      %12 = memref.load %arg4[%c0_8, %c0_9] : memref<1x1xf32, #tpu.memory_space<smem>>
      %13 = vector.broadcast %12 : f32 to vector<1x8xf32>
      %c0_10 = arith.constant 0 : index
      %c0_11 = arith.constant 0 : index
      %14 = vector.load %arg5[%c0_10, %c0_11] : memref<1x8xf32, #tpu.memory_space<vmem>>, vector<1x8xf32>
      tpu.vector_store %arg5[%c0_10, %c0_11], %13 {strides = array<i32>} : memref<1x8xf32, #tpu.memory_space<vmem>>, vector<1x8xf32>,
    } else {
    }
    %c0 = arith.constant 0 : index
    %c0_1 = arith.constant 0 : index
    %3 = vector.load %arg2[%c0, %c0_1] : memref<8x32xf32, #tpu.memory_space<vmem>>, vector<8x32xf32>
    %c0_2 = arith.constant 0 : index
    %c0_3 = arith.constant 0 : index
    %4 = vector.load %arg3[%c0_2, %c0_3] : memref<1x32xf32, #tpu.memory_space<vmem>>, vector<1x32xf32>
    %5 = vector.broadcast %4 : vector<1x32xf32> to vector<8x32xf32>
    %6 = arith.mulf %3, %5 : vector<8x32xf32>
    %cst = arith.constant dense<0.000000e+00> : vector<8xf32>
    %7 = vector.multi_reduction <add>, %6, %cst [1] : vector<8x32xf32> to vector<8xf32>
    %c0_4 = arith.constant 0 : index
    %c0_5 = arith.constant 0 : index
    %8 = vector.load %arg5[%c0_4, %c0_5] : memref<1x8xf32, #tpu.memory_space<vmem>>, vector<1x8xf32>
    %9 = vector.shape_cast %7 : vector<8xf32> to vector<1x8xf32>
    %10 = arith.addf %8, %9 : vector<1x8xf32>
    %c0_6 = arith.constant 0 : index
    %c0_7 = arith.constant 0 : index
    %11 = vector.load %arg5[%c0_6, %c0_7] : memref<1x8xf32, #tpu.memory_space<vmem>>, vector<1x8xf32>
    tpu.vector_store %arg5[%c0_6, %c0_7], %10 {strides = array<i32>} : memref<1x8xf32, #tpu.memory_space<vmem>>, vector<1x8xf32>,
    return
  }
  func.func @transform_0(%arg0: i32, %arg1: i32) -> (i32, i32) {
    %c0_i32 = arith.constant 0 : i32
    return %arg0, %arg1 : i32, i32
  }
  func.func @transform_1(%arg0: i32, %arg1: i32) -> (i32, i32) {
    %c0_i32 = arith.constant 0 : i32
    %c0_i32_0 = arith.constant 0 : i32
    return %c0_i32, %arg1 : i32, i32
  }
  func.func @transform_2(%arg0: i32, %arg1: i32) -> (i32, i32) {
    %c0_i32 = arith.constant 0 : i32
    %c0_i32_0 = arith.constant 0 : i32
    %c0_i32_1 = arith.constant 0 : i32
    return %c0_i32, %c0_i32_0 : i32, i32
  }
  func.func @transform_3(%arg0: i32, %arg1: i32) -> (i32, i32) {
    %c0_i32 = arith.constant 0 : i32
    %c0_i32_0 = arith.constant 0 : i32
    return %c0_i32, %arg0 : i32, i32
  }
}

</mosaic_0001>

<bundles_post_ra>
// kernel: tpu_custom_call.1
= control target key start
LH: loop header
LB: loop body
LE: loop exit
PB: predicated region body
PF: predicated region fallthrough
CT: control target
= control target key end

     0   :  { %9 = vsyncpa [#allocation4], 0  ;;  %s284_s0 = inlined_call_operand.hbm [shape: f32[8,32], index: 0, kind: input, shape index: {}]   ;;  %s285_s1 = inlined_call_operand.vmem [shape: f32[1,32], index: 1, kind: input, shape index: {}]   ;;  %s286_s2 = inlined_call_operand.<no memory space> [shape: f32[1,1], index: 2, kind: input, shape index: {}]   ;;  %s287_s3 = inlined_call_operand.hbm [shape: f32[1,8], index: 3, kind: output, shape index: {}]  }
   0x1   :  { %10 = vsyncpa [#allocation5], 0  ;;  %s228_s12 = smov [#allocation3]   ;;  %s180_s16 = scalar_lea.hbm %s284_s0, 128 }
   0x2   :  { %s17_s13 = sshll.u32 %s228_s12, 4  ;;  %p181_p0 = scmp.ne.s32.totalorder %s284_s0, %s180_s16  ;;  %s18_s13 = int_to_ptr.vmem [resolvable:$true] %s17_s13 }
   0x3   :  { %p184_p1 = scmp.lt.u32.totalorder %s180_s16, %s284_s0 }
   0x5   :  { %p186_p2 = pnand %p184_p1, %p181_p0 }
   0x7   :  { %189 = shalt.err (!%p186_p2)
}
   0x8   :  { %s190_s21 = scalar_lea.vmem %s18_s13, 128  ;;  %p195_p4 = scmp.lt.s32.totalorder %s18_s13, %s18_s13 }
   0x9   :  { %p191_p3 = scmp.ne.s32.totalorder %s18_s13, %s190_s21  ;;  %p196_p5 = scmp.lt.s32.totalorder %s190_s21, %s190_s21 }
   0xb   :  { %p197_p6 = por %p196_p5, %p195_p4 }
   0xd   :  { %p198_p7 = pnand %p197_p6, %p191_p3 }
   0xf   :  { %201 = shalt.err (!%p198_p7)
}
  0x10   :  { %20 = dma.hbm_to_vmem [thread:$0]  %s284_s0, 128, %s18_s13, [#allocation4]  }
  0x11   :  { %224 = dma.done.wait [#allocation4], 128  }
  0x12   :  { %225 = vsyncadd [#allocation4], 4294967168  ;;  %v33_v0 = vstv %s286_s2  ;;  %vm34_vm0 = vcmask 57344   ;;  %v36_v1 = vld [vmem:[#allocation3] sm:$0xff]  ;;  %vm45_vm1 = vcmask 261120   ;;  %v229_v5 = vmov 0  }
  0x13   :  { %35 = vst.msk [vmem:[#allocation6] sm:$0x1] %vm34_vm0, %v33_v0  ;;  %v174_v2 = vld [vmem:[%s285_s1] ss:$0 sm:$0xff]  ;;  %179 = vset.pattern.permute.xlu0 %v229_v5  ;;  %v51_v6 = vlaneseq  ;;  %v230_v10 = vmov 1966171168  }
  0x14   :  { %v44_v3 = vmul.f32 %v174_v2, %v36_v1  ;;  %v88_v11 = vunpack.c.l.s4 %v230_v10  ;;  %s231_s0 = smov [#allocation6]  }
  0x15   :  { %v52_v7 = vshrl.u32 %v51_v6, 7  ;;  %v136_v8 = vand.u32 127, %v51_v6  ;;  %s165_s1 = sshll.u32 %s231_s0, 4  ;;  %s166_s1 = int_to_ptr.vmem [resolvable:$true] %s165_s1 }
  0x16   :  { %v46_v4 = vsel %vm45_vm1, %v44_v3, 0.0  ;;  %v89_v12 = vunpack.c.0.s8 %v88_v11  ;;  %s202_s2 = scalar_lea.vmem %s166_s1, 16  ;;  %s206_s28 = scalar_lea.vmem %s166_s1, 32 }
  0x17   :  { %47 = vadd.xlane.f32.xlu0 %v46_v4  ;;  %v139_v9 = vsub.s32 %v136_v8, %v52_v7  ;;  %v53_v13 = vsub.s32 0, %v52_v7  ;;  %v57_v14 = vsub.s32 1, %v52_v7  ;;  %v61_v15 = vsub.s32 2, %v52_v7  ;;  %p203_p8 = scmp.ne.s32.totalorder %s166_s1, %s202_s2  ;;  %p207_p9 = scmp.lt.s32.totalorder %s166_s1, %s166_s1 }
  0x18   :  { %v65_v16 = vsub.s32 3, %v52_v7  ;;  %v69_v17 = vsub.s32 4, %v52_v7  ;;  %v73_v18 = vsub.s32 5, %v52_v7  ;;  %v77_v19 = vsub.s32 6, %v52_v7  ;;  %p208_p10 = scmp.lt.s32.totalorder %s206_s28, %s202_s2 }
  0x19   :  { %v81_v20 = vsub.s32 7, %v52_v7  ;;  %v92_v22 = vsub.s32 %v89_v12, %v52_v7 }
  0x1a   :  { %v49_v47 = vld [vmem:[#allocation6] sm:$0x1]  ;;  %p209_p11 = por %p208_p10, %p207_p9 }
  0x1c   :  { %p210_p12 = pnand %p209_p11, %p203_p8 }
  0xa4   :  { %v48_v21 = vpop.xlane.xlu0 %47 }
  0xa5   :  { %v54_v23 = vrot.slane %v48_v21, %v53_v13  ;;  %v58_v24 = vrot.slane %v48_v21, %v57_v14  ;;  %v62_v25 = vrot.slane %v48_v21, %v61_v15  ;;  %v66_v26 = vrot.slane %v48_v21, %v65_v16 }
  0xa6   :  { %v70_v27 = vrot.slane %v48_v21, %v69_v17  ;;  %v74_v28 = vrot.slane %v48_v21, %v73_v18  ;;  %v78_v29 = vrot.slane %v48_v21, %v77_v19  ;;  %v82_v30 = vrot.slane %v48_v21, %v81_v20 }
  0xa7   :  { %v83_v31 = vcombine.low %v54_v23, %v58_v24  ;;  %v84_v32 = vcombine.low %v62_v25, %v66_v26 }
  0xa8   :  { %v85_v33 = vcombine.low %v70_v27, %v74_v28  ;;  %v86_v34 = vcombine.low %v78_v29, %v82_v30 }
  0xa9   :  { %v93_v35 = vrot.slane %v83_v31, %v92_v22  ;;  %v100_v36 = vrot.slane %v84_v32, %v92_v22 }
  0xaa   :  { %v107_v37 = vrot.slane %v85_v33, %v92_v22  ;;  %v114_v38 = vrot.slane %v86_v34, %v92_v22 }
  0xab   :  { %v115_v39 = vcombine.low %v93_v35, %v100_v36 }
  0xac   :  { %v116_v40 = vcombine.low %v107_v37, %v114_v38 }
  0xad   :  { %v123_v41 = vrot.slane %v115_v39, %v92_v22 }
  0xae   :  { %v130_v42 = vrot.slane %v116_v40, %v92_v22 }
  0xb0   :  { %v131_v43 = vcombine.low %v123_v41, %v130_v42 }
  0xb2   :  { %133 = vperm.xlu0 %179, %v131_v43  }
 0x131   :  { %v134_v44 = vpop.permute.xlu0 %133 }
 0x132   :  { %v140_v45 = vrot.slane %v134_v44, %v139_v9 }
 0x134   :  { %v147_v46 = vrot.slane %v140_v45, %v92_v22 }
 0x136   :  { %v154_v48 = vrot.slane %v147_v46, %v92_v22 }
 0x138   :  { %v156_v49 = vadd.f32 %v154_v48, %v49_v47 }
 0x13a   :  { %158 = vst.msk [vmem:[#allocation6] sm:$0x1] %vm34_vm0, %v156_v49 }
 0x13b   :  { %213 = shalt.err (!%p210_p12)
}
 0x13c   :  { %s214_s4 = scalar_lea.hbm %s287_s3, 16 }
 0x13d   :  { %p215_p13 = scmp.ne.s32.totalorder %s287_s3, %s214_s4  ;;  %p218_p0 = scmp.lt.u32.totalorder %s214_s4, %s287_s3 }
 0x13f   :  { %p220_p1 = pnand %p218_p0, %p215_p13 }
 0x141   :  { %223 = shalt.err (!%p220_p1)
}
 0x142   :  { %168 = dma.vmem_to_hbm [thread:$0]  %s166_s1, 16, %s287_s3, [#allocation5]  }
 0x143   :  { %226 = dma.done.wait [#allocation5], 16  }
 0x144   :  { %227 = vsyncadd [#allocation5], 4294967280 }
 0x145   :  { %172 = vsyncpa [#allocation4], 1 }
 0x146   :  { %173 = vsyncpa [#allocation5], 1 }

</bundles_post_ra>
